<compile_context>
chip_gen: v6e
topology: v6e:2x2x1
jax: 0.10.0
libtpu: 0.0.40
codegen_flags: <defaults>
</compile_context>

<pallas_src>
import functools
import inspect

import jax
import jax.numpy as jnp
from jax import lax
from jax.experimental import pallas as pl
from jax.experimental.pallas import tpu as pltpu

# NOTE: zero-norm rows map to similarity 0 here; the PyTorch reference divides
# by zero and yields NaN/Inf for such rows (deliberate, documented difference).
_NORM_EPS = 1e-30


# ---------------------------------------------------------------------------
# Hardware introspection (generation-aware VMEM budget, v5e deep buffering).
# ---------------------------------------------------------------------------
@functools.lru_cache(maxsize=None)
def _device_kind() -> str:
  try:
    return jax.devices()[0].device_kind.lower()
  except Exception:
    return ""


@functools.lru_cache(maxsize=None)
def _vmem_budget_bytes() -> int:
  """Per-core VMEM budget allowed for pallas_call (with compiler headroom)."""
  cap = None
  try:
    cap = int(getattr(pltpu.get_tpu_info(), "vmem_capacity_bytes", 0)) or None
  except Exception:
    cap = None
  if cap is None:
    # v7x has 64 MiB per TensorCore; v5e / v6e have 128 MiB.
    cap = (64 << 20) if "v7" in _device_kind() else (128 << 20)
  # Leave ~25% headroom for compiler-internal scratch / pipelining state.
  return int(min(cap * 3 // 4, 96 << 20))


@functools.lru_cache(maxsize=None)
def _pair_stream_spec_kwargs():
  """Deeper buffering of the HBM-bound pair-matrix streams on v5e only."""
  kind = _device_kind()
  if not ("v5 lite" in kind or "v5e" in kind or "v5litepod" in kind):
    return ()
  try:
    if "pipeline_mode" in inspect.signature(pl.BlockSpec).parameters:
      return (("pipeline_mode", pl.Buffered(3)),)
  except Exception:
    pass
  return ()


# ---------------------------------------------------------------------------
# Kernel.
# ---------------------------------------------------------------------------
def _make_gram_sse_kernel(weighted, tm, tn, rows, cols):
  """Per-(i, j) tile: g = a @ b.T on the MXU, then accumulate
  sum((g - t)^2 [* w]) (and sum(w)) into a lane-dense (1, tn) partial that
  stays resident across the j (reduction) grid axis.

  Operands in a_ref / b_ref are already row-normalized (hoisted to the
  wrapper), so there are no per-tile XLU reduces / rsqrts / dtype churn."""
  mask_rows = (rows % tm) != 0
  mask_cols = (cols % tn) != 0

  def kernel(a_ref, b_ref, t_ref, *rest):
    if weighted:
      w_ref, sse_ref, wsum_ref = rest
    else:
      (sse_ref,) = rest

    i = pl.program_id(0)
    j = pl.program_id(1)

    @pl.when(j == 0)
    def _init():
      sse_ref[...] = jnp.zeros_like(sse_ref)
      if weighted:
        wsum_ref[...] = jnp.zeros_like(wsum_ref)

    # Gram tile on the MXU (native / bf16 operands, f32 accumulate).
    g = lax.dot_general(
        a_ref[...], b_ref[...],
        dimension_numbers=(((1,), (1,)), ((), ())),
        preferred_element_type=jnp.float32)          # (tm, tn)
    d = g - t_ref[...].astype(jnp.float32)
    sq = d * d

    # Ragged-edge mask (static decision): targets / weights are NOT padded in
    # HBM, so the last partial tile contains undefined values.  Use select
    # (not multiply) so NaN garbage cannot leak into the sums.
    mask = None
    if mask_rows:
      rid = i * tm + lax.broadcasted_iota(jnp.int32, (tm, tn), 0)
      mask = rid < rows
    if mask_cols:
      cid = j * tn + lax.broadcasted_iota(jnp.int32, (tm, tn), 1)
      cmask = cid < cols
      mask = cmask if mask is None else jnp.logical_and(mask, cmask)

    if weighted:
      w = w_ref[...].astype(jnp.float32)
      sq_w = sq * w
      if mask is not None:
        sq_w = jnp.where(mask, sq_w, 0.0)
        w = jnp.where(mask, w, 0.0)
      sse_ref[...] += jnp.sum(sq_w, axis=0, keepdims=True).reshape(sse_ref.shape)
      wsum_ref[...] += jnp.sum(w, axis=0, keepdims=True).reshape(wsum_ref.shape)
    else:
      if mask is not None:
        sq = jnp.where(mask, sq, 0.0)
      sse_ref[...] += jnp.sum(sq, axis=0, keepdims=True).reshape(sse_ref.shape)
    # TODO(synk): for D <= 128 (VPU-bound) the column reduction could be moved
    # onto the MXU via an ones-row matmul; left on the VPU for clarity.

  return kernel


def _gram_sse_sums(a, b, t, w, *, tm, tn, rows, cols):
  """sum((a @ b.T - t)**2 [* w]) (and sum(w)); a / b are pre-normalized rows.

  a: (Ma, Dp) with Ma % tm == 0;  b: (Mb, Dp) with Mb % tn == 0.
  t, w: (rows, cols) UNPADDED pair matrices streamed straight from HBM."""
  weighted = w is not None
  ma, dp = a.shape
  mb = b.shape[0]
  num_i, num_j = ma // tm, mb // tn
  grid = (num_i, num_j)

  pair_kwargs = dict(_pair_stream_spec_kwargs())

  in_specs = [
      pl.BlockSpec((tm, dp), lambda i, j: (i, 0)),                 # a rows (i)
      pl.BlockSpec((tn, dp), lambda i, j: (j, 0)),                 # b rows (j)
      pl.BlockSpec((tm, tn), lambda i, j: (i, j), **pair_kwargs),  # target tile
  ]
  args = [a, b, t]
  if weighted:
    in_specs.append(pl.BlockSpec((tm, tn), lambda i, j: (i, j), **pair_kwargs))
    args.append(w)

  out_block = pl.BlockSpec((1, 1, tn), lambda i, j: (i, 0, 0))
  part_shape = jax.ShapeDtypeStruct((num_i, 1, tn), jnp.float32)
  out_shape = (part_shape, part_shape) if weighted else part_shape
  out_specs = (out_block, out_block) if weighted else out_block

  # VMEM limit from the actual (dtype-aware) tile footprint, capped by the
  # generation-aware budget (v7x only has 64 MiB per TensorCore).
  item_ab = jnp.dtype(a.dtype).itemsize
  item_t = jnp.dtype(t.dtype).itemsize
  item_w = jnp.dtype(w.dtype).itemsize if weighted else 0
  pair_bufs = 3 if pair_kwargs else 2
  need = (2 * (tm + tn) * dp * item_ab            # double-buffered operand rows
          + pair_bufs * tm * tn * (item_t + item_w)   # pair-matrix streams
          + 3 * tm * tn * 4                       # f32 gram / residual tiles
          + 4 * 2 * tn * 4)                       # resident accumulators
  vmem_limit = int(min(max(2 * need + (16 << 20), 32 << 20),
                       _vmem_budget_bytes()))

  res = pl.pallas_call(
      _make_gram_sse_kernel(weighted, tm, tn, rows, cols),
      grid=grid,
      in_specs=in_specs,
      out_specs=out_specs,
      out_shape=out_shape,
      compiler_params=pltpu.CompilerParams(
          dimension_semantics=("parallel", "arbitrary"),
          vmem_limit_bytes=vmem_limit),
  )(*args)

  if weighted:
    sse, wsum = res
    return jnp.sum(sse), jnp.sum(wsum)
  return jnp.sum(res)


# ---------------------------------------------------------------------------
# Wrapper.
# ---------------------------------------------------------------------------
def _round_up(x, m):
  return ((x + m - 1) // m) * m


def _axis_tile(n, dp, mxu_itemsize):
  """Tile along one entity axis (rows of e or of f).

  * n < 128: use the full (unpadded) dimension -> single block, no masking.
  * otherwise lane-dense multiples of 128 (512 when it fits: ~85% of the HBM
    roofline vs ~63% at 256), capped so the double-buffered (tile, Dp) operand
    streams stay well inside the VMEM budget, and shrunk so the 'parallel'
    grid axis keeps >= 2 blocks (v7x megacore: 2 TensorCores per chip)."""
  if n < 128:
    return n
  budget = _vmem_budget_bytes()
  row_cap = max(128, budget // (6 * 2 * dp * mxu_itemsize))
  tile = 128
  for cand in (512, 256):
    if cand <= n and cand <= row_cap:
      tile = cand
      break
  while tile > 128 and _round_up(n, tile) // tile < 2:
    tile //= 2
  return tile


def _normalize_rows_padded(x, row_tile, dp, out_dtype):
  """Row-normalize x exactly once (f32 math), cast to the MXU dtype and
  zero-pad rows to a multiple of row_tile / features to dp (cheap O(N*D))."""
  n, d = x.shape
  x32 = x.astype(jnp.float32)
  sumsq = jnp.sum(x32 * x32, axis=1, keepdims=True)
  xh = (x32 * lax.rsqrt(jnp.maximum(sumsq, _NORM_EPS))).astype(out_dtype)
  n_pad = _round_up(n, row_tile)
  if n_pad != n or dp != d:
    xh = jnp.pad(xh, ((0, n_pad - n), (0, dp - d)))
  return xh


def _gba_loss(e, sr, f, sp, dti, cof, mxu_dtype=jnp.bfloat16):
  """Pallas forward of GBALoss; argument order matches the PyTorch module."""
  ne, de = e.shape
  nf, df = f.shape
  assert de == df, "e and f must share the feature dimension"
  if mxu_dtype is None:
    mxu_dtype = e.dtype

  dp = _round_up(de, 128)                    # MXU / lane-friendly contraction
  itemsize = jnp.dtype(mxu_dtype).itemsize
  te = _axis_tile(ne, dp, itemsize)          # tile along the e axis
  tf = _axis_tile(nf, dp, itemsize)          # tile along the f axis

  # Normalize each entity ONCE and share across terms (e: 1 & 3, f: 2 & 3).
  # Only these O(N*D) operands are padded; the O(N^2) targets / weights are
  # streamed unpadded and their ragged edges are masked in-kernel.
  e_hat = _normalize_rows_padded(e, te, dp, mxu_dtype)
  f_hat = _normalize_rows_padded(f, tf, dp, mxu_dtype)

  # TODO(synk): if sr / sp are known to be symmetric, visiting only the
  # upper-triangular blocks would halve work/traffic on terms 1 and 2.
  s1 = _gram_sse_sums(e_hat, e_hat, sr, None, tm=te, tn=te, rows=ne, cols=ne)
  s2 = _gram_sse_sums(f_hat, f_hat, sp, None, tm=tf, tn=tf, rows=nf, cols=nf)
  s3, cof_sum = _gram_sse_sums(e_hat, f_hat, dti, cof, tm=te, tn=tf,
                               rows=ne, cols=nf)

  los1 = s1 / jnp.float32(ne * ne)
  los2 = s2 / jnp.float32(nf * nf)
  los3 = s3 / cof_sum
  return los1 + los2 + jnp.float32(0.33) * los3


gba_loss = jax.jit(_gba_loss, static_argnames=("mxu_dtype",))


def gba_loss_reference(e, sr, f, sp, dti, cof):
  """Pure-JAX reference mirroring the PyTorch forward exactly."""
  e = e.astype(jnp.float32)
  f = f.astype(jnp.float32)
  en = jnp.sqrt(jnp.sum(e * e, axis=1, keepdims=True))
  fn = jnp.sqrt(jnp.sum(f * f, axis=1, keepdims=True))
  SN = (e @ e.T) / (en @ en.T)
  SNp = (f @ f.T) / (fn @ fn.T)
  SN3 = (e @ f.T) / (en @ fn.T)
  los1 = jnp.sum((SN - sr) ** 2) / SN.shape[0] ** 2
  los2 = jnp.sum((SNp - sp) ** 2) / SNp.shape[0] ** 2
  los3 = jnp.sum((SN3 - dti) ** 2 * cof) / jnp.sum(cof)
  return los1 + los2 + 0.33 * los3


def _make_inputs(key, ne, nf, d):
  k1, k2, k3, k4, k5, k6 = jax.random.split(key, 6)
  e = jax.random.normal(k1, (ne, d), dtype=jnp.float32)
  f = jax.random.normal(k2, (nf, d), dtype=jnp.float32)
  sr = jax.random.uniform(k3, (ne, ne), dtype=jnp.float32)
  sp = jax.random.uniform(k4, (nf, nf), dtype=jnp.float32)
  dti = jax.random.uniform(k5, (ne, nf), dtype=jnp.float32)
  cof = jax.random.uniform(k6, (ne, nf), dtype=jnp.float32) + 0.1
  return e, sr, f, sp, dti, cof


if __name__ == "__main__":
  key = jax.random.PRNGKey(0)
  k_small, k_big = jax.random.split(key)

  # Small shapes (single full-dim tiles, no masking path).
  args_s = _make_inputs(k_small, 8, 12, 32)
  ref_s = jax.block_until_ready(gba_loss_reference(*args_s))
  exact_s = jax.block_until_ready(gba_loss(*args_s, mxu_dtype=jnp.float32))
  assert jnp.allclose(exact_s, ref_s, rtol=1e-4, atol=1e-6), (exact_s, ref_s)
  fast_s = jax.block_until_ready(gba_loss(*args_s))       # default bf16 MXU path
  assert jnp.allclose(fast_s, ref_s, rtol=3e-2, atol=1e-3), (fast_s, ref_s)

  # Shapes exercising 128-wide tiles, padded operand rows and the in-kernel
  # ragged-edge masking of the UNPADDED pair matrices.
  args_b = _make_inputs(k_big, 200, 144, 96)
  ref_b = jax.block_until_ready(gba_loss_reference(*args_b))
  exact_b = jax.block_until_ready(gba_loss(*args_b, mxu_dtype=jnp.float32))
  assert jnp.allclose(exact_b, ref_b, rtol=5e-4, atol=1e-5), (exact_b, ref_b)
  fast_b = jax.block_until_ready(gba_loss(*args_b))
  assert jnp.allclose(fast_b, ref_b, rtol=3e-2, atol=1e-3), (fast_b, ref_b)

  print("KERNEL_OK")
</pallas_src>

<mosaic_0001>
module attributes {stable_mosaic.version = 11 : i64} {
  func.func @kernel(%arg0: i32, %arg1: i32, %arg2: memref<12x128xf32, #tpu.memory_space<vmem>>, %arg3: memref<12x128xf32, #tpu.memory_space<vmem>>, %arg4: memref<12x12xf32, #tpu.memory_space<vmem>>, %arg5: memref<1x1x12xf32, #tpu.memory_space<vmem>>) attributes {dimension_semantics = [#tpu.dimension_semantics<parallel>, #tpu.dimension_semantics<arbitrary>], iteration_bounds = array<i64: 1, 1>, scalar_prefetch = 0 : i64, scratch_operands = 0 : i64, tpu.core_type = #tpu.core_type<tc>, window_params = [{transform_indices = @transform_0, window_bounds = array<i64: 12, 128>}, {transform_indices = @transform_1, window_bounds = array<i64: 12, 128>}, {transform_indices = @transform_2, window_bounds = array<i64: 12, 12>}, {transform_indices = @transform_3, window_bounds = array<i64: 1, 1, 12>}]} {
    %c0_i32 = arith.constant 0 : i32
    %0 = arith.cmpi eq, %arg1, %c0_i32 : i32
    %1 = arith.extui %0 : i1 to i32
    %c0_i32_0 = arith.constant 0 : i32
    %2 = arith.cmpi ne, %1, %c0_i32_0 : i32
    scf.if %2 {
      %cst_13 = arith.constant 0.000000e+00 : f32
      %15 = vector.broadcast %cst_13 : f32 to vector<1x1x12xf32>
      %c0_14 = arith.constant 0 : index
      %c0_15 = arith.constant 0 : index
      %c0_16 = arith.constant 0 : index
      %16 = vector.load %arg5[%c0_14, %c0_15, %c0_16] : memref<1x1x12xf32, #tpu.memory_space<vmem>>, vector<1x1x12xf32>
      tpu.vector_store %arg5[%c0_14, %c0_15, %c0_16], %15 {strides = array<i32>} : memref<1x1x12xf32, #tpu.memory_space<vmem>>, vector<1x1x12xf32>,
    } else {
    }
    %c0 = arith.constant 0 : index
    %c0_1 = arith.constant 0 : index
    %3 = vector.load %arg2[%c0, %c0_1] : memref<12x128xf32, #tpu.memory_space<vmem>>, vector<12x128xf32>
    %c0_2 = arith.constant 0 : index
    %c0_3 = arith.constant 0 : index
    %4 = vector.load %arg3[%c0_2, %c0_3] : memref<12x128xf32, #tpu.memory_space<vmem>>, vector<12x128xf32>
    %cst = arith.constant dense<0.000000e+00> : vector<12x12xf32>
    %5 = tpu.matmul %3, %4, %cst {dimension_numbers = #tpu.dot_dimension_numbers<[1], [1], [0], [0], [0, 0, 1, 0], [], []>} : vector<12x128xf32>, vector<12x128xf32>, vector<12x12xf32> -> vector<12x12xf32>
    %c0_4 = arith.constant 0 : index
    %c0_5 = arith.constant 0 : index
    %6 = vector.load %arg4[%c0_4, %c0_5] : memref<12x12xf32, #tpu.memory_space<vmem>>, vector<12x12xf32>
    %7 = arith.subf %5, %6 : vector<12x12xf32>
    %8 = arith.mulf %7, %7 : vector<12x12xf32>
    %c0_6 = arith.constant 0 : index
    %c0_7 = arith.constant 0 : index
    %c0_8 = arith.constant 0 : index
    %9 = vector.load %arg5[%c0_6, %c0_7, %c0_8] : memref<1x1x12xf32, #tpu.memory_space<vmem>>, vector<1x1x12xf32>
    %cst_9 = arith.constant dense<0.000000e+00> : vector<12xf32>
    %10 = vector.multi_reduction <add>, %8, %cst_9 [0] : vector<12x12xf32> to vector<12xf32>
    %11 = vector.shape_cast %10 : vector<12xf32> to vector<1x12xf32>
    %12 = vector.shape_cast %11 : vector<1x12xf32> to vector<1x1x12xf32>
    %13 = arith.addf %9, %12 : vector<1x1x12xf32>
    %c0_10 = arith.constant 0 : index
    %c0_11 = arith.constant 0 : index
    %c0_12 = arith.constant 0 : index
    %14 = vector.load %arg5[%c0_10, %c0_11, %c0_12] : memref<1x1x12xf32, #tpu.memory_space<vmem>>, vector<1x1x12xf32>
    tpu.vector_store %arg5[%c0_10, %c0_11, %c0_12], %13 {strides = array<i32>} : memref<1x1x12xf32, #tpu.memory_space<vmem>>, vector<1x1x12xf32>,
    return
  }
  func.func @transform_0(%arg0: i32, %arg1: i32) -> (i32, i32) {
    %c0_i32 = arith.constant 0 : i32
    %c0_i32_0 = arith.constant 0 : i32
    return %arg0, %c0_i32 : i32, i32
  }
  func.func @transform_1(%arg0: i32, %arg1: i32) -> (i32, i32) {
    %c0_i32 = arith.constant 0 : i32
    %c0_i32_0 = arith.constant 0 : i32
    return %arg1, %c0_i32 : i32, i32
  }
  func.func @transform_2(%arg0: i32, %arg1: i32) -> (i32, i32) {
    %c0_i32 = arith.constant 0 : i32
    return %arg0, %arg1 : i32, i32
  }
  func.func @transform_3(%arg0: i32, %arg1: i32) -> (i32, i32, i32) {
    %c0_i32 = arith.constant 0 : i32
    %c0_i32_0 = arith.constant 0 : i32
    %c0_i32_1 = arith.constant 0 : i32
    return %arg0, %c0_i32, %c0_i32_0 : i32, i32, i32
  }
}

module attributes {stable_mosaic.version = 11 : i64} {
  func.func @kernel(%arg0: i32, %arg1: i32, %arg2: memref<8x128xf32, #tpu.memory_space<vmem>>, %arg3: memref<8x128xf32, #tpu.memory_space<vmem>>, %arg4: memref<8x8xf32, #tpu.memory_space<vmem>>, %arg5: memref<1x1x8xf32, #tpu.memory_space<vmem>>) attributes {dimension_semantics = [#tpu.dimension_semantics<parallel>, #tpu.dimension_semantics<arbitrary>], iteration_bounds = array<i64: 1, 1>, scalar_prefetch = 0 : i64, scratch_operands = 0 : i64, tpu.core_type = #tpu.core_type<tc>, window_params = [{transform_indices = @transform_0, window_bounds = array<i64: 8, 128>}, {transform_indices = @transform_1, window_bounds = array<i64: 8, 128>}, {transform_indices = @transform_2, window_bounds = array<i64: 8, 8>}, {transform_indices = @transform_3, window_bounds = array<i64: 1, 1, 8>}]} {
    %c0_i32 = arith.constant 0 : i32
    %0 = arith.cmpi eq, %arg1, %c0_i32 : i32
    %1 = arith.extui %0 : i1 to i32
    %c0_i32_0 = arith.constant 0 : i32
    %2 = arith.cmpi ne, %1, %c0_i32_0 : i32
    scf.if %2 {
      %cst_13 = arith.constant 0.000000e+00 : f32
      %15 = vector.broadcast %cst_13 : f32 to vector<1x1x8xf32>
      %c0_14 = arith.constant 0 : index
      %c0_15 = arith.constant 0 : index
      %c0_16 = arith.constant 0 : index
      %16 = vector.load %arg5[%c0_14, %c0_15, %c0_16] : memref<1x1x8xf32, #tpu.memory_space<vmem>>, vector<1x1x8xf32>
      tpu.vector_store %arg5[%c0_14, %c0_15, %c0_16], %15 {strides = array<i32>} : memref<1x1x8xf32, #tpu.memory_space<vmem>>, vector<1x1x8xf32>,
    } else {
    }
    %c0 = arith.constant 0 : index
    %c0_1 = arith.constant 0 : index
    %3 = vector.load %arg2[%c0, %c0_1] : memref<8x128xf32, #tpu.memory_space<vmem>>, vector<8x128xf32>
    %c0_2 = arith.constant 0 : index
    %c0_3 = arith.constant 0 : index
    %4 = vector.load %arg3[%c0_2, %c0_3] : memref<8x128xf32, #tpu.memory_space<vmem>>, vector<8x128xf32>
    %cst = arith.constant dense<0.000000e+00> : vector<8x8xf32>
    %5 = tpu.matmul %3, %4, %cst {dimension_numbers = #tpu.dot_dimension_numbers<[1], [1], [0], [0], [0, 0, 1, 0], [], []>} : vector<8x128xf32>, vector<8x128xf32>, vector<8x8xf32> -> vector<8x8xf32>
    %c0_4 = arith.constant 0 : index
    %c0_5 = arith.constant 0 : index
    %6 = vector.load %arg4[%c0_4, %c0_5] : memref<8x8xf32, #tpu.memory_space<vmem>>, vector<8x8xf32>
    %7 = arith.subf %5, %6 : vector<8x8xf32>
    %8 = arith.mulf %7, %7 : vector<8x8xf32>
    %c0_6 = arith.constant 0 : index
    %c0_7 = arith.constant 0 : index
    %c0_8 = arith.constant 0 : index
    %9 = vector.load %arg5[%c0_6, %c0_7, %c0_8] : memref<1x1x8xf32, #tpu.memory_space<vmem>>, vector<1x1x8xf32>
    %cst_9 = arith.constant dense<0.000000e+00> : vector<8xf32>
    %10 = vector.multi_reduction <add>, %8, %cst_9 [0] : vector<8x8xf32> to vector<8xf32>
    %11 = vector.shape_cast %10 : vector<8xf32> to vector<1x8xf32>
    %12 = vector.shape_cast %11 : vector<1x8xf32> to vector<1x1x8xf32>
    %13 = arith.addf %9, %12 : vector<1x1x8xf32>
    %c0_10 = arith.constant 0 : index
    %c0_11 = arith.constant 0 : index
    %c0_12 = arith.constant 0 : index
    %14 = vector.load %arg5[%c0_10, %c0_11, %c0_12] : memref<1x1x8xf32, #tpu.memory_space<vmem>>, vector<1x1x8xf32>
    tpu.vector_store %arg5[%c0_10, %c0_11, %c0_12], %13 {strides = array<i32>} : memref<1x1x8xf32, #tpu.memory_space<vmem>>, vector<1x1x8xf32>,
    return
  }
  func.func @transform_0(%arg0: i32, %arg1: i32) -> (i32, i32) {
    %c0_i32 = arith.constant 0 : i32
    %c0_i32_0 = arith.constant 0 : i32
    return %arg0, %c0_i32 : i32, i32
  }
  func.func @transform_1(%arg0: i32, %arg1: i32) -> (i32, i32) {
    %c0_i32 = arith.constant 0 : i32
    %c0_i32_0 = arith.constant 0 : i32
    return %arg1, %c0_i32 : i32, i32
  }
  func.func @transform_2(%arg0: i32, %arg1: i32) -> (i32, i32) {
    %c0_i32 = arith.constant 0 : i32
    return %arg0, %arg1 : i32, i32
  }
  func.func @transform_3(%arg0: i32, %arg1: i32) -> (i32, i32, i32) {
    %c0_i32 = arith.constant 0 : i32
    %c0_i32_0 = arith.constant 0 : i32
    %c0_i32_1 = arith.constant 0 : i32
    return %arg0, %c0_i32, %c0_i32_0 : i32, i32, i32
  }
}

module attributes {stable_mosaic.version = 11 : i64} {
  func.func @kernel(%arg0: i32, %arg1: i32, %arg2: memref<8x128xf32, #tpu.memory_space<vmem>>, %arg3: memref<12x128xf32, #tpu.memory_space<vmem>>, %arg4: memref<8x12xf32, #tpu.memory_space<vmem>>, %arg5: memref<8x12xf32, #tpu.memory_space<vmem>>, %arg6: memref<1x1x12xf32, #tpu.memory_space<vmem>>, %arg7: memref<1x1x12xf32, #tpu.memory_space<vmem>>) attributes {dimension_semantics = [#tpu.dimension_semantics<parallel>, #tpu.dimension_semantics<arbitrary>], iteration_bounds = array<i64: 1, 1>, scalar_prefetch = 0 : i64, scratch_operands = 0 : i64, tpu.core_type = #tpu.core_type<tc>, window_params = [{transform_indices = @transform_0, window_bounds = array<i64: 8, 128>}, {transform_indices = @transform_1, window_bounds = array<i64: 12, 128>}, {transform_indices = @transform_2, window_bounds = array<i64: 8, 12>}, {transform_indices = @transform_3, window_bounds = array<i64: 8, 12>}, {transform_indices = @transform_4, window_bounds = array<i64: 1, 1, 12>}, {transform_indices = @transform_5, window_bounds = array<i64: 1, 1, 12>}]} {
    %c0_i32 = arith.constant 0 : i32
    %0 = arith.cmpi eq, %arg1, %c0_i32 : i32
    %1 = arith.extui %0 : i1 to i32
    %c0_i32_0 = arith.constant 0 : i32
    %2 = arith.cmpi ne, %1, %c0_i32_0 : i32
    scf.if %2 {
      %cst_22 = arith.constant 0.000000e+00 : f32
      %23 = vector.broadcast %cst_22 : f32 to vector<1x1x12xf32>
      %c0_23 = arith.constant 0 : index
      %c0_24 = arith.constant 0 : index
      %c0_25 = arith.constant 0 : index
      %24 = vector.load %arg6[%c0_23, %c0_24, %c0_25] : memref<1x1x12xf32, #tpu.memory_space<vmem>>, vector<1x1x12xf32>
      tpu.vector_store %arg6[%c0_23, %c0_24, %c0_25], %23 {strides = array<i32>} : memref<1x1x12xf32, #tpu.memory_space<vmem>>, vector<1x1x12xf32>,
      %cst_26 = arith.constant 0.000000e+00 : f32
      %25 = vector.broadcast %cst_26 : f32 to vector<1x1x12xf32>
      %c0_27 = arith.constant 0 : index
      %c0_28 = arith.constant 0 : index
      %c0_29 = arith.constant 0 : index
      %26 = vector.load %arg7[%c0_27, %c0_28, %c0_29] : memref<1x1x12xf32, #tpu.memory_space<vmem>>, vector<1x1x12xf32>
      tpu.vector_store %arg7[%c0_27, %c0_28, %c0_29], %25 {strides = array<i32>} : memref<1x1x12xf32, #tpu.memory_space<vmem>>, vector<1x1x12xf32>,
    } else {
    }
    %c0 = arith.constant 0 : index
    %c0_1 = arith.constant 0 : index
    %3 = vector.load %arg2[%c0, %c0_1] : memref<8x128xf32, #tpu.memory_space<vmem>>, vector<8x128xf32>
    %c0_2 = arith.constant 0 : index
    %c0_3 = arith.constant 0 : index
    %4 = vector.load %arg3[%c0_2, %c0_3] : memref<12x128xf32, #tpu.memory_space<vmem>>, vector<12x128xf32>
    %cst = arith.constant dense<0.000000e+00> : vector<8x12xf32>
    %5 = tpu.matmul %3, %4, %cst {dimension_numbers = #tpu.dot_dimension_numbers<[1], [1], [0], [0], [0, 0, 1, 0], [], []>} : vector<8x128xf32>, vector<12x128xf32>, vector<8x12xf32> -> vector<8x12xf32>
    %c0_4 = arith.constant 0 : index
    %c0_5 = arith.constant 0 : index
    %6 = vector.load %arg4[%c0_4, %c0_5] : memref<8x12xf32, #tpu.memory_space<vmem>>, vector<8x12xf32>
    %7 = arith.subf %5, %6 : vector<8x12xf32>
    %8 = arith.mulf %7, %7 : vector<8x12xf32>
    %c0_6 = arith.constant 0 : index
    %c0_7 = arith.constant 0 : index
    %9 = vector.load %arg5[%c0_6, %c0_7] : memref<8x12xf32, #tpu.memory_space<vmem>>, vector<8x12xf32>
    %10 = arith.mulf %8, %9 : vector<8x12xf32>
    %c0_8 = arith.constant 0 : index
    %c0_9 = arith.constant 0 : index
    %c0_10 = arith.constant 0 : index
    %11 = vector.load %arg6[%c0_8, %c0_9, %c0_10] : memref<1x1x12xf32, #tpu.memory_space<vmem>>, vector<1x1x12xf32>
    %cst_11 = arith.constant dense<0.000000e+00> : vector<12xf32>
    %12 = vector.multi_reduction <add>, %10, %cst_11 [0] : vector<8x12xf32> to vector<12xf32>
    %13 = vector.shape_cast %12 : vector<12xf32> to vector<1x12xf32>
    %14 = vector.shape_cast %13 : vector<1x12xf32> to vector<1x1x12xf32>
    %15 = arith.addf %11, %14 : vector<1x1x12xf32>
    %c0_12 = arith.constant 0 : index
    %c0_13 = arith.constant 0 : index
    %c0_14 = arith.constant 0 : index
    %16 = vector.load %arg6[%c0_12, %c0_13, %c0_14] : memref<1x1x12xf32, #tpu.memory_space<vmem>>, vector<1x1x12xf32>
    tpu.vector_store %arg6[%c0_12, %c0_13, %c0_14], %15 {strides = array<i32>} : memref<1x1x12xf32, #tpu.memory_space<vmem>>, vector<1x1x12xf32>,
    %c0_15 = arith.constant 0 : index
    %c0_16 = arith.constant 0 : index
    %c0_17 = arith.constant 0 : index
    %17 = vector.load %arg7[%c0_15, %c0_16, %c0_17] : memref<1x1x12xf32, #tpu.memory_space<vmem>>, vector<1x1x12xf32>
    %cst_18 = arith.constant dense<0.000000e+00> : vector<12xf32>
    %18 = vector.multi_reduction <add>, %9, %cst_18 [0] : vector<8x12xf32> to vector<12xf32>
    %19 = vector.shape_cast %18 : vector<12xf32> to vector<1x12xf32>
    %20 = vector.shape_cast %19 : vector<1x12xf32> to vector<1x1x12xf32>
    %21 = arith.addf %17, %20 : vector<1x1x12xf32>
    %c0_19 = arith.constant 0 : index
    %c0_20 = arith.constant 0 : index
    %c0_21 = arith.constant 0 : index
    %22 = vector.load %arg7[%c0_19, %c0_20, %c0_21] : memref<1x1x12xf32, #tpu.memory_space<vmem>>, vector<1x1x12xf32>
    tpu.vector_store %arg7[%c0_19, %c0_20, %c0_21], %21 {strides = array<i32>} : memref<1x1x12xf32, #tpu.memory_space<vmem>>, vector<1x1x12xf32>,
    return
  }
  func.func @transform_0(%arg0: i32, %arg1: i32) -> (i32, i32) {
    %c0_i32 = arith.constant 0 : i32
    %c0_i32_0 = arith.constant 0 : i32
    return %arg0, %c0_i32 : i32, i32
  }
  func.func @transform_1(%arg0: i32, %arg1: i32) -> (i32, i32) {
    %c0_i32 = arith.constant 0 : i32
    %c0_i32_0 = arith.constant 0 : i32
    return %arg1, %c0_i32 : i32, i32
  }
  func.func @transform_2(%arg0: i32, %arg1: i32) -> (i32, i32) {
    %c0_i32 = arith.constant 0 : i32
    return %arg0, %arg1 : i32, i32
  }
  func.func @transform_3(%arg0: i32, %arg1: i32) -> (i32, i32) {
    %c0_i32 = arith.constant 0 : i32
    return %arg0, %arg1 : i32, i32
  }
  func.func @transform_4(%arg0: i32, %arg1: i32) -> (i32, i32, i32) {
    %c0_i32 = arith.constant 0 : i32
    %c0_i32_0 = arith.constant 0 : i32
    %c0_i32_1 = arith.constant 0 : i32
    return %arg0, %c0_i32, %c0_i32_0 : i32, i32, i32
  }
  func.func @transform_5(%arg0: i32, %arg1: i32) -> (i32, i32, i32) {
    %c0_i32 = arith.constant 0 : i32
    %c0_i32_0 = arith.constant 0 : i32
    %c0_i32_1 = arith.constant 0 : i32
    return %arg0, %c0_i32, %c0_i32_0 : i32, i32, i32
  }
}

</mosaic_0001>

<bundles_post_ra>
// kernel: _gba_loss.5
= control target key start
LH: loop header
LB: loop body
LE: loop exit
PB: predicated region body
PF: predicated region fallthrough
CT: control target
= control target key end

     0   :  { %vm23_vm0 = vcmask 90112   ;;  %v146_v0 = vmov 0.0   ;;  %vm147_vm1 = vmmov 0   ;;  %vm105_vm2 = vcmask 97280   ;;  %s217_s4 = inlined_call_operand.vmem [shape: f32[1,1,12], index: 4, kind: output, shape index: {0}]   ;;  %s218_s5 = inlined_call_operand.vmem [shape: f32[1,1,12], index: 5, kind: output, shape index: {1}]   ;;  %s219_s1 = inlined_call_operand.vmem [shape: f32[12,128], index: 1, kind: input, shape index: {}]   ;;  %s220_s0 = inlined_call_operand.vmem [shape: f32[8,128], index: 0, kind: input, shape index: {}]   ;;  %s221_s3 = inlined_call_operand.vmem [shape: f32[8,12], index: 3, kind: input, shape index: {}]   ;;  %s222_s2 = inlined_call_operand.vmem [shape: f32[8,12], index: 2, kind: input, shape index: {}]  }
   0x1   :  { %24 = vst.msk [vmem:[%s217_s4] sm:$0x1] %vm23_vm0, %v146_v0  ;;  %25 = vst.msk [vmem:[%s218_s5] sm:$0x1] %vm23_vm0, %v146_v0  ;;  %137 = vmatprep.subr.mxu0 %v146_v0  ;;  %v28_v1 = vld [vmem:[%s219_s1 + $0x8] sm:$0xf]  ;;  %141 = vmatprep.mubr.msk.f32.mxu0 %vm147_vm1, %v146_v0 }
   0x2   :  { %138 = vmatpush3.xpose.msra.mxu0 %v28_v1  ;;  %v27_v2 = vld [vmem:[%s219_s1] sm:$0xff] }
   0x3   :  { %139 = vmatprep.subr.mxu0 %v146_v0  ;;  %v26_v3 = vld [vmem:[%s220_s0] sm:$0xff] }
   0x4   :  { %v102_v4 = vld [vmem:[%s221_s3] sm:$0xff] }
   0x5   :  { %v117_v5 = vsel %vm105_vm2, %v102_v4, 0.0  ;;  %v99_v14 = vld [vmem:[%s222_s2] sm:$0xff] }
   0x6   :  { %140 = vmatpush3.xpose.msra.mxu0 %v27_v2  ;;  %v118_v6 = vrot.slane %v117_v5, 4 }
   0x8   :  { %v119_v7 = vadd.f32 %v118_v6, %v117_v5  ;;  %v116_v12 = vld [vmem:[%s218_s5] sm:$0x1] }
   0x9   :  { %142 = vmatmul.mubr.f32.vlgmr.msra.gmra.mxu0 %v26_v3  ;;  %v104_v26 = vld [vmem:[%s217_s4] sm:$0x1] }
   0xa   :  { %v120_v8 = vrot.slane %v119_v7, 2 }
   0xc   :  { %v121_v9 = vadd.f32 %v120_v8, %v119_v7 }
   0xe   :  { %v122_v10 = vrot.slane %v121_v9, 1 }
  0x10   :  { %v123_v11 = vadd.f32 %v122_v10, %v121_v9 }
  0x12   :  { %v124_v13 = vadd.f32 %v123_v11, %v116_v12 }
  0x14   :  { %125 = vst.msk [vmem:[%s218_s5] sm:$0x1] %vm23_vm0, %v124_v13 }
  0xc9   :  { %v95_v15 = vpop.f32.mrf.mxu0 }
  0xca   :  { %v100_v16 = vsub.f32 %v95_v15, %v99_v14 }
  0xcb   :  { %v143_v17 = vpop.f32.mrf.mxu0 }
  0xcc   :  { %v101_v18 = vmul.f32 %v100_v16, %v100_v16 }
  0xce   :  { %v103_v19 = vmul.f32 %v102_v4, %v101_v18 }
  0xd0   :  { %v106_v20 = vsel %vm105_vm2, %v103_v19, 0.0 }
  0xd1   :  { %v107_v21 = vrot.slane %v106_v20, 4 }
  0xd3   :  { %v108_v22 = vadd.f32 %v107_v21, %v106_v20 }
  0xd5   :  { %v109_v23 = vrot.slane %v108_v22, 2 }
  0xd7   :  { %v110_v24 = vadd.f32 %v109_v23, %v108_v22 }
  0xd9   :  { %v111_v25 = vrot.slane %v110_v24, 1 }
  0xdb   :  { %v112_v27 = vadd.f32 %v111_v25, %v110_v24 }
  0xdd   :  { %v113_v28 = vadd.f32 %v112_v27, %v104_v26 }
  0xdf   :  { %115 = vst.msk [vmem:[%s217_s4] sm:$0x1] %vm23_vm0, %v113_v28 }

// kernel: _gba_loss.4
= control target key start
LH: loop header
LB: loop body
LE: loop exit
PB: predicated region body
PF: predicated region fallthrough
CT: control target
= control target key end

     0   :  { %vm18_vm0 = vcmask 90112   ;;  %v136_v4 = vmov 0.0   ;;  %vm108_vm1 = vcmask 93184   ;;  %vm106_vm2 = vcmask 97280   ;;  %s186_s1 = inlined_call_operand.vmem [shape: f32[12,128], index: 1, kind: input, shape index: {}, may-alias: {0,1}]   ;;  %s187_s0 = inlined_call_operand.vmem [shape: f32[12,128], index: 0, kind: input, shape index: {}, may-alias: {0,1}]   ;;  %s188_s3 = inlined_call_operand.vmem [shape: f32[1,1,12], index: 3, kind: output, shape index: {}]   ;;  %s189_s2 = inlined_call_operand.vmem [shape: f32[12,12], index: 2, kind: input, shape index: {}]  }
   0x1   :  { %v23_v0 = vld [vmem:[%s186_s1 + $0x8] sm:$0xf]  ;;  %v22_v1 = vld [vmem:[%s186_s1] sm:$0xff]  ;;  %19 = vst.msk [vmem:[%s188_s3] sm:$0x1] %vm18_vm0, %v136_v4 }
   0x2   :  { %v20_v2 = vld [vmem:[%s187_s0] sm:$0xff]  ;;  %128 = vmatprep.subr.mxu0 %v23_v0  ;;  %v21_v3 = vld [vmem:[%s187_s0 + $0x8] sm:$0xf] }
   0x3   :  { %132 = vmatprep.mubr.f32.mxu0 %v20_v2  ;;  %129 = vmatpush3.xpose.msra.mxu0 %v23_v0  ;;  %v100_v5 = vld [vmem:[%s189_s2 + $0x8] sm:$0xf]  ;;  %v99_v7 = vld [vmem:[%s189_s2] sm:$0xff] }
   0x4   :  { %130 = vmatprep.subr.mxu0 %v22_v1 }
   0x7   :  { %131 = vmatpush3.xpose.msra.mxu0 %v22_v1 }
   0x8   :  { %v105_v21 = vld [vmem:[%s188_s3] sm:$0x1] }
   0xa   :  { %133 = vmatmul.mubr.f32.vlgmr.msra.gmra.mxu0 %v21_v3 }
  0xca   :  { %v134_v6 = vpop.f32.mrf.mxu0 }
  0xcb   :  { %v102_v8 = vsub.f32 %v134_v6, %v100_v5 }
  0xcc   :  { %v90_v9 = vpop.f32.mrf.mxu0 }
  0xcd   :  { %v104_v10 = vmul.f32 %v102_v8, %v102_v8  ;;  %v101_v11 = vsub.f32 %v90_v9, %v99_v7 }
  0xcf   :  { %v103_v12 = vmul.f32 %v101_v11, %v101_v11  ;;  %v109_v13 = vsel %vm108_vm1, %v104_v10, 0.0 }
  0xd1   :  { %v107_v14 = vsel %vm106_vm2, %v103_v12, 0.0 }
  0xd2   :  { %v110_v15 = vadd.f32 %v109_v13, %v107_v14 }
  0xd4   :  { %v111_v16 = vrot.slane %v110_v15, 4 }
  0xd6   :  { %v112_v17 = vadd.f32 %v111_v16, %v110_v15 }
  0xd8   :  { %v113_v18 = vrot.slane %v112_v17, 2 }
  0xda   :  { %v114_v19 = vadd.f32 %v113_v18, %v112_v17 }
  0xdc   :  { %v115_v20 = vrot.slane %v114_v19, 1 }
  0xde   :  { %v116_v22 = vadd.f32 %v115_v20, %v114_v19 }
  0xe0   :  { %v117_v23 = vadd.f32 %v116_v22, %v105_v21 }
  0xe2   :  { %119 = vst.msk [vmem:[%s188_s3] sm:$0x1] %vm18_vm0, %v117_v23 }

// kernel: _gba_loss.3
= control target key start
LH: loop header
LB: loop body
LE: loop exit
PB: predicated region body
PF: predicated region fallthrough
CT: control target
= control target key end

     0   :  { %vm18_vm0 = vcmask 57344   ;;  %v120_v0 = vmov 0.0   ;;  %vm121_vm1 = vmmov 0   ;;  %vm96_vm2 = vcmask 64512   ;;  %s162_s3 = inlined_call_operand.vmem [shape: f32[1,1,8], index: 3, kind: output, shape index: {}]   ;;  %s163_s1 = inlined_call_operand.vmem [shape: f32[8,128], index: 1, kind: input, shape index: {}, may-alias: {0,1}]   ;;  %s164_s0 = inlined_call_operand.vmem [shape: f32[8,128], index: 0, kind: input, shape index: {}, may-alias: {0,1}]   ;;  %s165_s2 = inlined_call_operand.vmem [shape: f32[8,8], index: 2, kind: input, shape index: {}]  }
   0x1   :  { %19 = vst.msk [vmem:[%s162_s3] sm:$0x1] %vm18_vm0, %v120_v0  ;;  %113 = vmatprep.subr.mxu0 %v120_v0  ;;  %v21_v1 = vld [vmem:[%s163_s1] sm:$0xff]  ;;  %115 = vmatprep.mubr.msk.f32.mxu0 %vm121_vm1, %v120_v0 }
   0x2   :  { %114 = vmatpush3.xpose.msra.mxu0 %v21_v1  ;;  %v20_v2 = vld [vmem:[%s164_s0] sm:$0xff] }
   0x3   :  { %v92_v3 = vld [vmem:[%s165_s2] sm:$0xff] }
   0x5   :  { %116 = vmatmul.mubr.f32.vlgmr.msra.gmra.mxu0 %v20_v2 }
   0x8   :  { %v95_v14 = vld [vmem:[%s162_s3] sm:$0x1] }
  0xc5   :  { %v88_v4 = vpop.f32.mrf.mxu0 }
  0xc6   :  { %v93_v5 = vsub.f32 %v88_v4, %v92_v3 }
  0xc7   :  { %v117_v6 = vpop.f32.mrf.mxu0 }
  0xc8   :  { %v94_v7 = vmul.f32 %v93_v5, %v93_v5 }
  0xca   :  { %v97_v8 = vsel %vm96_vm2, %v94_v7, 0.0 }
  0xcb   :  { %v98_v9 = vrot.slane %v97_v8, 4 }
  0xcd   :  { %v99_v10 = vadd.f32 %v98_v9, %v97_v8 }
  0xcf   :  { %v100_v11 = vrot.slane %v99_v10, 2 }
  0xd1   :  { %v101_v12 = vadd.f32 %v100_v11, %v99_v10 }
  0xd3   :  { %v102_v13 = vrot.slane %v101_v12, 1 }
  0xd5   :  { %v103_v15 = vadd.f32 %v102_v13, %v101_v12 }
  0xd7   :  { %v104_v16 = vadd.f32 %v103_v15, %v95_v14 }
  0xd9   :  { %106 = vst.msk [vmem:[%s162_s3] sm:$0x1] %vm18_vm0, %v104_v16 }

</bundles_post_ra>
